<compile_context>
chip_gen: v5e
topology: v5e:2x2
jax: 0.10.0
libtpu: 0.0.40
codegen_flags: <defaults>
</compile_context>

<pallas_src>
import jax
import jax.numpy as jnp
from jax.experimental import pallas as pl
from jax.experimental.pallas import tpu as pltpu

HIDDEN1 = 128      # layer-1 width (already lane-dense)
HIDDEN2 = 64       # true layer-2 width
HIDDEN2_PAD = 128  # layer-2 width padded to full lanes
OUT_PAD = 128      # n_actions padded to full lanes (lane-dense output store)
MAX_TB = 1024      # batch-tile cap (overhead amortisation; VMEM < 3 MiB)


def dqn_kernel(x_ref, w1_ref, b1_ref, w2_ref, b2_ref, w3_ref, b3_ref, o_ref):
    """Fused 3-layer MLP: bf16 MXU operands, f32 accumulation, f32 bias + ReLU."""
    x = x_ref[...]                                                  # (TB, D_in) bf16

    # Layer 1: Linear(D_in, 128) + ReLU
    h1 = jnp.dot(x, w1_ref[...], preferred_element_type=jnp.float32) + b1_ref[...]
    h1 = jnp.maximum(h1, 0.0).astype(jnp.bfloat16)                  # (TB, 128)

    # Layer 2: Linear(128, 64 -> 128 padded) + ReLU (padded lanes stay exactly 0)
    h2 = jnp.dot(h1, w2_ref[...], preferred_element_type=jnp.float32) + b2_ref[...]
    h2 = jnp.maximum(h2, 0.0).astype(jnp.bfloat16)                  # (TB, 128)

    # Layer 3: Linear(64 -> 128, n_actions -> 128 padded); no activation (Q values)
    q = jnp.dot(h2, w3_ref[...], preferred_element_type=jnp.float32) + b3_ref[...]
    o_ref[...] = q.astype(o_ref.dtype)                              # (TB, 128) lane-dense store


def _round_up(n, m):
    return ((n + m - 1) // m) * m


def _batch_tiling(b):
    """Pick (tb, n_steps): tb multiple of 8, tb <= MAX_TB, and >= 2 grid steps
    whenever the batch allows it (so v7x's two TensorCores both get work)."""
    b_pad = _round_up(max(b, 8), 8)
    n_steps = max(1, -(-b_pad // MAX_TB))     # ceil-div
    if b_pad >= 16:
        n_steps = max(2, n_steps)             # keep the parallel axis splittable
    tb = _round_up(-(-b_pad // n_steps), 8)
    return tb, n_steps


def dqn_forward_padded(x, kernel_params, *, out_dtype=jnp.bfloat16):
    """x: (B, D_in), bf16 preferred (no wrapper cast then).  Returns the padded
    lane-dense Q buffer (n_steps*tb, OUT_PAD) in out_dtype; columns >= n_actions
    and rows >= B are padding (padded action lanes are exactly 0)."""
    w1, b1, w2, b2, w3, b3 = kernel_params
    if x.dtype != jnp.bfloat16:
        x = x.astype(jnp.bfloat16)            # no-op if caller already stores bf16
    B, d_in = x.shape

    tb, n_steps = _batch_tiling(B)
    b_tiled = tb * n_steps
    if b_tiled != B:                          # only for ragged batches
        x = jnp.pad(x, ((0, b_tiled - B), (0, 0)))

    # Weights/biases: full-array blocks with constant index maps -> DMA'd once,
    # VMEM-resident across the whole batch grid (no re-DMA per step).
    resident = lambda a: pl.BlockSpec(a.shape, lambda i: (0, 0))

    return pl.pallas_call(
        dqn_kernel,
        out_shape=jax.ShapeDtypeStruct((b_tiled, OUT_PAD), out_dtype),
        grid=(n_steps,),
        in_specs=[
            pl.BlockSpec((tb, d_in), lambda i: (i, 0)),   # x: tiled over batch
            resident(w1), resident(b1),
            resident(w2), resident(b2),
            resident(w3), resident(b3),
        ],
        out_specs=pl.BlockSpec((tb, OUT_PAD), lambda i: (i, 0)),
        compiler_params=pltpu.CompilerParams(
            dimension_semantics=("parallel",)),   # batch axis splits over v7x's 2 TCs
    )(x, w1, b1, w2, b2, w3, b3)


def dqn_forward(x, kernel_params, n_actions, *, out_dtype=jnp.bfloat16):
    """Module-equivalent forward: (B, D_in) -> (B, n_actions) Q values."""
    B = x.shape[0]
    out = dqn_forward_padded(x, kernel_params, out_dtype=out_dtype)
    # Single wrapper op: drop padded action lanes (and padded rows, if any).
    # Must happen before any argmax over actions (padded lanes are 0, not -inf).
    return out[:B, :n_actions]


def init_params(key, input_shape, n_actions):
    """f32 params matching the PyTorch module (weights stored transposed as
    (in, out) so the kernel computes x @ W + b directly)."""
    ks = jax.random.split(key, 6)

    def lin(kw, kb, d_in, d_out):
        bound = 1.0 / jnp.sqrt(jnp.float32(d_in))
        w = jax.random.uniform(kw, (d_in, d_out), jnp.float32, -bound, bound)
        b = jax.random.uniform(kb, (1, d_out), jnp.float32, -bound, bound)
        return w, b

    w1, b1 = lin(ks[0], ks[1], input_shape, HIDDEN1)
    w2, b2 = lin(ks[2], ks[3], HIDDEN1, HIDDEN2)
    w3, b3 = lin(ks[4], ks[5], HIDDEN2, n_actions)
    return dict(w1=w1, b1=b1, w2=w2, b2=b2, w3=w3, b3=b3)


def prepare_kernel_params(p):
    """Zero-pad to lane-dense shapes and cast weights to bf16 (biases stay f32
    since they are added to the f32-accumulated matmul result)."""
    def pad2(a, rows, cols):
        return jnp.pad(a, ((0, rows - a.shape[0]), (0, cols - a.shape[1])))

    w1 = p["w1"].astype(jnp.bfloat16)                              # (D_in, 128)
    b1 = p["b1"]                                                   # (1, 128) f32
    w2 = pad2(p["w2"], HIDDEN1, HIDDEN2_PAD).astype(jnp.bfloat16)  # (128, 128)
    b2 = pad2(p["b2"], 1, HIDDEN2_PAD)                             # (1, 128) f32
    w3 = pad2(p["w3"], HIDDEN2_PAD, OUT_PAD).astype(jnp.bfloat16)  # (128, 128)
    b3 = pad2(p["b3"], 1, OUT_PAD)                                 # (1, 128) f32
    return (w1, b1, w2, b2, w3, b3)


def dqn_reference_f32(x, p):
    """Plain-JAX f32 reference (original module semantics)."""
    h1 = jnp.maximum(x @ p["w1"] + p["b1"], 0.0)
    h2 = jnp.maximum(h1 @ p["w2"] + p["b2"], 0.0)
    return h2 @ p["w3"] + p["b3"]


def dqn_reference_bf16(x, p):
    """Precision-matched reference (bf16 operands, f32 accumulation)."""
    bf = lambda a: a.astype(jnp.bfloat16)
    h1 = jnp.maximum(
        jnp.dot(bf(x), bf(p["w1"]), preferred_element_type=jnp.float32) + p["b1"], 0.0)
    h2 = jnp.maximum(
        jnp.dot(bf(h1), bf(p["w2"]), preferred_element_type=jnp.float32) + p["b2"], 0.0)
    return jnp.dot(bf(h2), bf(p["w3"]), preferred_element_type=jnp.float32) + p["b3"]


if __name__ == "__main__":
    key = jax.random.PRNGKey(0)
    k_x, k_p = jax.random.split(key)

    batch = 256        # multiple of 8 -> no wrapper pad; grid of 2 parallel steps
    input_shape = 16   # small Pong state vector
    n_actions = 6      # Pong action space

    x_f32 = jax.random.normal(k_x, (batch, input_shape), jnp.float32)
    x_bf16 = x_f32.astype(jnp.bfloat16)        # simulate bf16 replay-buffer storage
    params = init_params(k_p, input_shape, n_actions)
    kparams = prepare_kernel_params(params)

    out = dqn_forward(x_bf16, kparams, n_actions)
    out = jax.block_until_ready(out)
    assert out.shape == (batch, n_actions)
    out_f32 = out.astype(jnp.float32)

    # Precision-matched check (bf16 operands, f32 accumulation, bf16 output).
    ref_bf16 = dqn_reference_bf16(x_f32, params)
    assert jnp.allclose(out_f32, ref_bf16, atol=5e-2, rtol=5e-2), \
        "mismatch vs bf16-matched reference"

    # Loose semantic check against the original f32 module.
    ref_f32 = dqn_reference_f32(x_f32, params)
    assert jnp.allclose(out_f32, ref_f32, atol=1.5e-1, rtol=1.5e-1), \
        "mismatch vs f32 reference"

    print("KERNEL_OK")
</pallas_src>

<mosaic_0001>
module attributes {stable_mosaic.version = 11 : i64} {
  func.func @dqn_kernel(%arg0: i32, %arg1: memref<128x16xbf16, #tpu.memory_space<vmem>>, %arg2: memref<16x128xbf16, #tpu.memory_space<vmem>>, %arg3: memref<1x128xf32, #tpu.memory_space<vmem>>, %arg4: memref<128x128xbf16, #tpu.memory_space<vmem>>, %arg5: memref<1x128xf32, #tpu.memory_space<vmem>>, %arg6: memref<128x128xbf16, #tpu.memory_space<vmem>>, %arg7: memref<1x128xf32, #tpu.memory_space<vmem>>, %arg8: memref<128x128xbf16, #tpu.memory_space<vmem>>) attributes {dimension_semantics = [#tpu.dimension_semantics<parallel>], iteration_bounds = array<i64: 2>, scalar_prefetch = 0 : i64, scratch_operands = 0 : i64, tpu.core_type = #tpu.core_type<tc>, window_params = [{transform_indices = @transform_0, window_bounds = array<i64: 128, 16>}, {pipeline_mode = #tpu.pipeline_mode<synchronous>, transform_indices = @transform_1, window_bounds = array<i64: 16, 128>}, {pipeline_mode = #tpu.pipeline_mode<synchronous>, transform_indices = @transform_2, window_bounds = array<i64: 1, 128>}, {pipeline_mode = #tpu.pipeline_mode<synchronous>, transform_indices = @transform_3, window_bounds = array<i64: 128, 128>}, {pipeline_mode = #tpu.pipeline_mode<synchronous>, transform_indices = @transform_4, window_bounds = array<i64: 1, 128>}, {pipeline_mode = #tpu.pipeline_mode<synchronous>, transform_indices = @transform_5, window_bounds = array<i64: 128, 128>}, {pipeline_mode = #tpu.pipeline_mode<synchronous>, transform_indices = @transform_6, window_bounds = array<i64: 1, 128>}, {transform_indices = @transform_7, window_bounds = array<i64: 128, 128>}]} {
    %c0 = arith.constant 0 : index
    %c0_0 = arith.constant 0 : index
    %0 = vector.load %arg1[%c0, %c0_0] : memref<128x16xbf16, #tpu.memory_space<vmem>>, vector<128x16xbf16>
    %c0_1 = arith.constant 0 : index
    %c0_2 = arith.constant 0 : index
    %1 = vector.load %arg2[%c0_1, %c0_2] : memref<16x128xbf16, #tpu.memory_space<vmem>>, vector<16x128xbf16>
    %cst = arith.constant dense<0.000000e+00> : vector<128x128xf32>
    %2 = tpu.matmul %0, %1, %cst {dimension_numbers = #tpu.dot_dimension_numbers<[1], [0], [0], [1], [0, 0, 1, 1], [], []>} : vector<128x16xbf16>, vector<16x128xbf16>, vector<128x128xf32> -> vector<128x128xf32>
    %c0_3 = arith.constant 0 : index
    %c0_4 = arith.constant 0 : index
    %3 = vector.load %arg3[%c0_3, %c0_4] : memref<1x128xf32, #tpu.memory_space<vmem>>, vector<1x128xf32>
    %4 = vector.broadcast %3 : vector<1x128xf32> to vector<128x128xf32>
    %5 = arith.addf %2, %4 : vector<128x128xf32>
    %cst_5 = arith.constant 0.000000e+00 : f32
    %6 = vector.broadcast %cst_5 : f32 to vector<128x128xf32>
    %7 = arith.maximumf %5, %6 : vector<128x128xf32>
    %8 = arith.truncf %7 : vector<128x128xf32> to vector<128x128xbf16>
    %c0_6 = arith.constant 0 : index
    %c0_7 = arith.constant 0 : index
    %9 = vector.load %arg4[%c0_6, %c0_7] : memref<128x128xbf16, #tpu.memory_space<vmem>>, vector<128x128xbf16>
    %cst_8 = arith.constant dense<0.000000e+00> : vector<128x128xf32>
    %10 = tpu.matmul %8, %9, %cst_8 {dimension_numbers = #tpu.dot_dimension_numbers<[1], [0], [0], [1], [0, 0, 1, 1], [], []>} : vector<128x128xbf16>, vector<128x128xbf16>, vector<128x128xf32> -> vector<128x128xf32>
    %c0_9 = arith.constant 0 : index
    %c0_10 = arith.constant 0 : index
    %11 = vector.load %arg5[%c0_9, %c0_10] : memref<1x128xf32, #tpu.memory_space<vmem>>, vector<1x128xf32>
    %12 = vector.broadcast %11 : vector<1x128xf32> to vector<128x128xf32>
    %13 = arith.addf %10, %12 : vector<128x128xf32>
    %cst_11 = arith.constant 0.000000e+00 : f32
    %14 = vector.broadcast %cst_11 : f32 to vector<128x128xf32>
    %15 = arith.maximumf %13, %14 : vector<128x128xf32>
    %16 = arith.truncf %15 : vector<128x128xf32> to vector<128x128xbf16>
    %c0_12 = arith.constant 0 : index
    %c0_13 = arith.constant 0 : index
    %17 = vector.load %arg6[%c0_12, %c0_13] : memref<128x128xbf16, #tpu.memory_space<vmem>>, vector<128x128xbf16>
    %cst_14 = arith.constant dense<0.000000e+00> : vector<128x128xf32>
    %18 = tpu.matmul %16, %17, %cst_14 {dimension_numbers = #tpu.dot_dimension_numbers<[1], [0], [0], [1], [0, 0, 1, 1], [], []>} : vector<128x128xbf16>, vector<128x128xbf16>, vector<128x128xf32> -> vector<128x128xf32>
    %c0_15 = arith.constant 0 : index
    %c0_16 = arith.constant 0 : index
    %19 = vector.load %arg7[%c0_15, %c0_16] : memref<1x128xf32, #tpu.memory_space<vmem>>, vector<1x128xf32>
    %20 = vector.broadcast %19 : vector<1x128xf32> to vector<128x128xf32>
    %21 = arith.addf %18, %20 : vector<128x128xf32>
    %22 = arith.truncf %21 : vector<128x128xf32> to vector<128x128xbf16>
    %c0_17 = arith.constant 0 : index
    %c0_18 = arith.constant 0 : index
    %23 = vector.load %arg8[%c0_17, %c0_18] : memref<128x128xbf16, #tpu.memory_space<vmem>>, vector<128x128xbf16>
    tpu.vector_store %arg8[%c0_17, %c0_18], %22 {strides = array<i32>} : memref<128x128xbf16, #tpu.memory_space<vmem>>, vector<128x128xbf16>,
    return
  }
  func.func @transform_0(%arg0: i32) -> (i32, i32) {
    %c0_i32 = arith.constant 0 : i32
    %c0_i32_0 = arith.constant 0 : i32
    return %arg0, %c0_i32 : i32, i32
  }
  func.func @transform_1(%arg0: i32) -> (i32, i32) {
    %c0_i32 = arith.constant 0 : i32
    %c0_i32_0 = arith.constant 0 : i32
    %c0_i32_1 = arith.constant 0 : i32
    return %c0_i32, %c0_i32_0 : i32, i32
  }
  func.func @transform_2(%arg0: i32) -> (i32, i32) {
    %c0_i32 = arith.constant 0 : i32
    %c0_i32_0 = arith.constant 0 : i32
    %c0_i32_1 = arith.constant 0 : i32
    return %c0_i32, %c0_i32_0 : i32, i32
  }
  func.func @transform_3(%arg0: i32) -> (i32, i32) {
    %c0_i32 = arith.constant 0 : i32
    %c0_i32_0 = arith.constant 0 : i32
    %c0_i32_1 = arith.constant 0 : i32
    return %c0_i32, %c0_i32_0 : i32, i32
  }
  func.func @transform_4(%arg0: i32) -> (i32, i32) {
    %c0_i32 = arith.constant 0 : i32
    %c0_i32_0 = arith.constant 0 : i32
    %c0_i32_1 = arith.constant 0 : i32
    return %c0_i32, %c0_i32_0 : i32, i32
  }
  func.func @transform_5(%arg0: i32) -> (i32, i32) {
    %c0_i32 = arith.constant 0 : i32
    %c0_i32_0 = arith.constant 0 : i32
    %c0_i32_1 = arith.constant 0 : i32
    return %c0_i32, %c0_i32_0 : i32, i32
  }
  func.func @transform_6(%arg0: i32) -> (i32, i32) {
    %c0_i32 = arith.constant 0 : i32
    %c0_i32_0 = arith.constant 0 : i32
    %c0_i32_1 = arith.constant 0 : i32
    return %c0_i32, %c0_i32_0 : i32, i32
  }
  func.func @transform_7(%arg0: i32) -> (i32, i32) {
    %c0_i32 = arith.constant 0 : i32
    %c0_i32_0 = arith.constant 0 : i32
    return %arg0, %c0_i32 : i32, i32
  }
}

</mosaic_0001>

<bundles_post_ra>
// kernel: tpu_custom_call.1
= control target key start
LH: loop header
LB: loop body
LE: loop exit
PB: predicated region body
PF: predicated region fallthrough
CT: control target
= control target key end

     0   :  { %12 = vsyncpa [#allocation3], 0  ;;  %s1369_s0 = inlined_call_operand.vmem [shape: bf16[256,16], index: 0, kind: input, shape index: {}]   ;;  %s1370_s1 = inlined_call_operand.vmem [shape: bf16[16,128], index: 1, kind: input, shape index: {}]   ;;  %s1371_s2 = inlined_call_operand.vmem [shape: f32[1,128], index: 2, kind: input, shape index: {}]   ;;  %s1372_s3 = inlined_call_operand.vmem [shape: bf16[128,128], index: 3, kind: input, shape index: {}]   ;;  %s1373_s4 = inlined_call_operand.vmem [shape: f32[1,128], index: 4, kind: input, shape index: {}]   ;;  %s1374_s5 = inlined_call_operand.vmem [shape: bf16[128,128], index: 5, kind: input, shape index: {}]   ;;  %s1375_s6 = inlined_call_operand.vmem [shape: f32[1,128], index: 6, kind: input, shape index: {}]   ;;  %s1376_s7 = inlined_call_operand.hbm [shape: bf16[256,128], index: 7, kind: output, shape index: {}]  }
   0x1   :  { %14 = vsyncpa [#allocation3 + $0x1], 0  ;;  %s1174_s24 = smov 0   ;;  %s1176_s25 = smov 0  }
   0x2   :  { %s1178_s26 = smov 0   ;;  %s1180_s27 = smov 0  }
   0x3 LB: > { %s1195_s28 = sadd.s32 4294967295, %s1130_s27   ;;  %s815_s29 = sadd.s32 4294967294, %s1130_s27   ;;  %s1130_s27 = sphi %s1180_s27, %s1382_s27   ;;  %s1126_s26 = sphi %s1178_s26, %s1381_s26   ;;  %s1122_s25 = sphi %s1176_s25, %s1380_s25   ;;  %s1118_s24 = sphi %s1174_s24, %s1379_s24  }
   0x4   : > { %s1199_s30 = sadd.s32 1, %s1130_s27   ;;  %s179_s8 = sadd.s32 1, %s1126_s26 }
   0x5   : > { %s176_s9 = ssub.s32 %s1130_s27, %s1199_s30  ;;  %p189_p0 = scmp.ne.s32.totalorder %s1126_s26, %s1122_s25 }
   0x6   : > { %p177_p1 = scmp.eq.s32.totalorder %s176_s9, 0  ;;  %p190_p2 = scmp.eq.s32.totalorder %s1195_s28, 1 }
   0x7   : > { %p195_p3 = scmp.ne.s32.totalorder %s1122_s25, %s1118_s24  ;;  %p196_p4 = scmp.eq.s32.totalorder %s815_s29, 1 }
   0x8   : > { %s1210_s10 = scalar_select %p177_p1, %s1126_s26, %s179_s8  }
   0x9   : > { %p1212_p5 = por %p190_p2, %p189_p0  ;;  %p1216_p6 = por %p196_p4, %p195_p3 }
   0xa   : > { %p818_p7 = scmp.ge.s32.totalorder %s1130_s27, 1  ;;  %p241_p8 = scmp.lt.s32.totalorder %s1130_s27, 3 }
   0xc   : > { %p242_p9 = pnand %p818_p7, %p241_p8 }
   0xd   : > { %s820_s15 = sshll.u32 (!%p242_p9), %s1195_s28, 4  ;;  %s270_s14 = sand.u32 (!%p242_p9), 1, %s1122_s25  }
   0xe   : > { %245 = sbr.rel (%p242_p9) target bundleno = 569 (0x239), region = 48  ;;  %p274_p10 = scmp.lt.s32.totalorder (!%p242_p9), %s820_s15, 31 }
   0xf   : > { %s819_s17 = sshll.u32 (!%p242_p9), %s270_s14, 6  ;;  %s960_s20 = sshll.u32 (!%p242_p9), %s1195_s28, 6 }
  0x10   : > { %s1325_s18 = scalar_lea.vmem (!%p242_p9), [#allocation2], %s819_s17  ;;  %s749_s23 = scalar_lea.hbm (!%p242_p9), %s1376_s7, %s960_s20 }
  0x11   : > { %s750_s29 = sshll.u32 (!%p242_p9), %s1325_s18, 4  ;;  %s738_s8 = scalar_lea.sflag (!%p242_p9), [#allocation3], %s270_s14  ;;  %s751_s29 = int_to_ptr.vmem [resolvable:$true] %s750_s29 }
  0x13   : > { %v943_v0 = vld [vmem:[%s1370_s1] sm:$0xff]  ;;  %s1384_s15 = smov (!%p274_p10, %s820_s15), 31  ;;  %vm349_vm0 = vcmask 130048   ;;  %v951_v6 = vld [vmem:[%s1372_s3 + $0x38] sm:$0xff]  ;;  %v950_v8 = vld [vmem:[%s1372_s3 + $0x30] sm:$0xff] }
  0x14   : > { %381 = vmatpush.bf16.msra.mxu0 %v943_v0  ;;  %s821_s16 = sshll.u32 %s1384_s15, 2  ;;  %515 = vmatpush.bf16.msra.mxu1 %v951_v6  ;;  %v949_v9 = vld [vmem:[%s1372_s3 + $0x28] sm:$0xff]  ;;  %v948_v10 = vld [vmem:[%s1372_s3 + $0x20] sm:$0xff]  ;;  %v947_v11 = vld [vmem:[%s1372_s3 + $0x18] sm:$0xff] }
  0x15   : > { %s1229_s19 = scalar_lea.vmem %s1369_s0, %s821_s16  ;;  %1008 = vmatpush.bf16.msra.mxu3 %v951_v6  ;;  %v946_v13 = vld [vmem:[%s1372_s3 + $0x10] sm:$0xff]  ;;  %v945_v14 = vld [vmem:[%s1372_s3 + $0x8] sm:$0xff]  ;;  %v944_v15 = vld [vmem:[%s1372_s3] sm:$0xff]  ;;  %s1088_s16 = scalar_lea.hbm %s1376_s7, 128 }
  0x16   : > { %v935_v1 = vld [vmem:[%s1229_s19] sm:$0xff]  ;;  %v936_v2 = vld [vmem:[%s1229_s19 + $0x8] sm:$0xff]  ;;  %v937_v3 = vld [vmem:[%s1229_s19 + $0x10] sm:$0xff] }
  0x17   : > { %858 = vmatmul.msk.bf16.vlgmr.msra.gmra.mxu0 %vm349_vm0, %v935_v1  ;;  %v938_v4 = vld [vmem:[%s1229_s19 + $0x18] sm:$0xff]  ;;  %v939_v5 = vld [vmem:[%s1229_s19 + $0x20] sm:$0xff]  ;;  %v940_v7 = vld [vmem:[%s1229_s19 + $0x28] sm:$0xff] }
  0x18   : > { %516 = vmatpush.bf16.msra.mxu1 %v950_v8  ;;  %v941_v12 = vld [vmem:[%s1229_s19 + $0x30] sm:$0xff]  ;;  %v942_v16 = vld [vmem:[%s1229_s19 + $0x38] sm:$0xff]  ;;  %v1274_v18 = vld [vmem:[%s1371_s2] ss:$0 sm:$0xff]  ;;  %s752_s19 = sshll.u32 %s749_s23, 4  ;;  %s753_s19 = int_to_ptr.hbm [resolvable:$true] %s752_s19 }
  0x19   : > { %1009 = vmatpush.bf16.msra.mxu3 %v950_v8  ;;  %v959_v57 = vld [vmem:[%s1374_s5 + $0x38] sm:$0xff]  ;;  %v958_v61 = vld [vmem:[%s1374_s5 + $0x30] sm:$0xff]  ;;  %v957_v63 = vld [vmem:[%s1374_s5 + $0x28] sm:$0xff]  ;;  %s1082_s9 = sshra.s32 %s753_s19, 4  ;;  %s1083_s9 = int_to_ptr.hbm [resolvable:$true] %s1082_s9 }
  0x1a   : > { %656 = vmatpush.bf16.msra.mxu2 %v959_v57  ;;  %v956_v0 = vld [vmem:[%s1374_s5 + $0x20] sm:$0xff]  ;;  %v954_v8 = vld [vmem:[%s1374_s5 + $0x10] sm:$0xff]  ;;  %s1084_s13 = scalar_lea.hbm %s1083_s9, 64  ;;  %p1089_p0 = scmp.lt.s32.totalorder %s1083_s9, %s1376_s7 }
  0x1b   : > { %p1085_p11 = scmp.ne.s32.totalorder %s1083_s9, %s1084_s13  ;;  %p1090_p1 = scmp.lt.s32.totalorder %s1088_s16, %s1084_s13 }
  0x1c   : > { %517 = vmatpush.bf16.msra.mxu1 %v949_v9 }
  0x1d   : > { %1010 = vmatpush.bf16.msra.mxu3 %v949_v9  ;;  %p1086_p12 = pnand %p1085_p11, %p1212_p5  ;;  %p1091_p2 = por %p1090_p1, %p1089_p0 }
  0x1e   : > { %657 = vmatpush.bf16.msra.mxu2 %v958_v61 }
  0x1f   : > { %p1087_p13 = pneg %p1086_p12 }
  0x20   : > { %518 = vmatpush.bf16.msra.mxu1 %v948_v10 }
  0x21   : > { %1011 = vmatpush.bf16.msra.mxu3 %v948_v10  ;;  %v953_v10 = vld [vmem:[%s1374_s5 + $0x8] sm:$0xff]  ;;  %p1092_p3 = pnand %p1091_p2, %p1087_p13 }
  0x22   : > { %658 = vmatpush.bf16.msra.mxu2 %v957_v63 }
  0x24   : > { %519 = vmatpush.bf16.msra.mxu1 %v947_v11 }
  0x25   : > { %1012 = vmatpush.bf16.msra.mxu3 %v947_v11  ;;  %v952_v11 = vld [vmem:[%s1374_s5] sm:$0xff] }
  0x26   : > { %659 = vmatpush.bf16.msra.mxu2 %v956_v0 }
  0x27   : > { %859 = vmatmul.msk.bf16.gmra.mxu0 %vm349_vm0, %v936_v2 }
  0x28   : > { %520 = vmatpush.bf16.msra.mxu1 %v946_v13 }
  0x29   : > { %1013 = vmatpush.bf16.msra.mxu3 %v946_v13 }
  0x2c   : > { %521 = vmatpush.bf16.msra.mxu1 %v945_v14 }
  0x2d   : > { %1014 = vmatpush.bf16.msra.mxu3 %v945_v14 }
  0x30   : > { %522 = vmatpush.bf16.msra.mxu1 %v944_v15 }
  0x31   : > { %1015 = vmatpush.bf16.msra.mxu3 %v944_v15 }
  0x35   : > { %1016 = vmatpush.bf16.msrb.mxu3 %v959_v57 }
  0x37   : > { %860 = vmatmul.msk.bf16.gmra.mxu0 %vm349_vm0, %v937_v3 }
  0x39   : > { %1017 = vmatpush.bf16.msrb.mxu3 %v958_v61 }
  0x3d   : > { %1018 = vmatpush.bf16.msrb.mxu3 %v957_v63 }
  0x41   : > { %1019 = vmatpush.bf16.msrb.mxu3 %v956_v0 }
  0x47   : > { %861 = vmatmul.msk.bf16.gmra.mxu0 %vm349_vm0, %v938_v4  ;;  %v955_v4 = vld [vmem:[%s1374_s5 + $0x18] sm:$0xff] }
  0x48   : > { %660 = vmatpush.bf16.msra.mxu2 %v955_v4  ;;  %1020 = vmatpush.bf16.msrb.mxu3 %v955_v4 }
  0x4c   : > { %661 = vmatpush.bf16.msra.mxu2 %v954_v8  ;;  %1021 = vmatpush.bf16.msrb.mxu3 %v954_v8 }
  0x50   : > { %662 = vmatpush.bf16.msra.mxu2 %v953_v10  ;;  %1022 = vmatpush.bf16.msrb.mxu3 %v953_v10 }
  0x54   : > { %663 = vmatpush.bf16.msra.mxu2 %v952_v11  ;;  %1023 = vmatpush.bf16.msrb.mxu3 %v952_v11 }
  0x57   : > { %862 = vmatmul.msk.bf16.gmra.mxu0 %vm349_vm0, %v939_v5 }
  0x67   : > { %863 = vmatmul.msk.bf16.gmra.mxu0 %vm349_vm0, %v940_v7 }
  0x77   : > { %864 = vmatmul.msk.bf16.gmra.mxu0 %vm349_vm0, %v941_v12 }
  0x87   : > { %865 = vmatmul.msk.bf16.gmra.mxu0 %vm349_vm0, %v942_v16 }
  0x94   : > { %v383_v17 = vpop.f32.mrf.mxu0 }
  0x95   : > { %v384_v19 = vadd.f32 %v1274_v18, %v383_v17 }
  0x97   : > { %v423_v22 = vmax.f32 %v384_v19, 0.0 }
  0x9c   : > { %v385_v20 = vpop.f32.mrf.mxu0 }
  0x9d   : > { %v386_v21 = vadd.f32 %v1274_v18, %v385_v20  ;;  %v1066_v20 = vld [vmem:[%s1373_s4] ss:$0 sm:$0xff] }
  0x9f   : > { %v424_v23 = vmax.f32 %v386_v21, 0.0 }
  0xa1   : > { %v439_v24 = vpack.c.bf16 %v424_v23, %v423_v22 }
  0xa3   : > { %523 = vmatmul.bf16.vlgmr.msra.gmra.mxu1 %v439_v24 }
  0xa4   : > { %v388_v25 = vpop.f32.mrf.mxu0 }
  0xa5   : > { %v389_v26 = vadd.f32 %v1274_v18, %v388_v25 }
  0xa7   : > { %v425_v29 = vmax.f32 %v389_v26, 0.0 }
  0xac   : > { %v390_v27 = vpop.f32.mrf.mxu0 }
  0xad   : > { %v391_v28 = vadd.f32 %v1274_v18, %v390_v27 }
  0xaf   : > { %v426_v30 = vmax.f32 %v391_v28, 0.0 }
  0xb1   : > { %v440_v31 = vpack.c.bf16 %v426_v30, %v425_v29 }
  0xb3   : > { %528 = vmatmul.bf16.gmra.mxu1 %v440_v31 }
  0xb4   : > { %v393_v32 = vpop.f32.mrf.mxu0 }
  0xb5   : > { %v394_v33 = vadd.f32 %v1274_v18, %v393_v32 }
  0xb7   : > { %v427_v36 = vmax.f32 %v394_v33, 0.0 }
  0xbc   : > { %v395_v34 = vpop.f32.mrf.mxu0 }
  0xbd   : > { %v396_v35 = vadd.f32 %v1274_v18, %v395_v34 }
  0xbf   : > { %v428_v37 = vmax.f32 %v396_v35, 0.0 }
  0xc1   : > { %v441_v38 = vpack.c.bf16 %v428_v37, %v427_v36 }
  0xc3   : > { %533 = vmatmul.bf16.gmra.mxu1 %v441_v38 }
  0xc4   : > { %v398_v39 = vpop.f32.mrf.mxu0 }
  0xc5   : > { %v399_v40 = vadd.f32 %v1274_v18, %v398_v39 }
  0xc7   : > { %v429_v43 = vmax.f32 %v399_v40, 0.0 }
  0xcc   : > { %v400_v41 = vpop.f32.mrf.mxu0 }
  0xcd   : > { %v401_v42 = vadd.f32 %v1274_v18, %v400_v41 }
  0xcf   : > { %v430_v44 = vmax.f32 %v401_v42, 0.0 }
  0xd1   : > { %v442_v45 = vpack.c.bf16 %v430_v44, %v429_v43 }
  0xd3   : > { %538 = vmatmul.bf16.gmra.mxu1 %v442_v45 }
  0xd4   : > { %v403_v46 = vpop.f32.mrf.mxu0 }
  0xd5   : > { %v404_v47 = vadd.f32 %v1274_v18, %v403_v46 }
  0xd7   : > { %v431_v50 = vmax.f32 %v404_v47, 0.0 }
  0xdc   : > { %v405_v48 = vpop.f32.mrf.mxu0 }
  0xdd   : > { %v406_v49 = vadd.f32 %v1274_v18, %v405_v48 }
  0xdf   : > { %v432_v51 = vmax.f32 %v406_v49, 0.0 }
  0xe1   : > { %v443_v52 = vpack.c.bf16 %v432_v51, %v431_v50 }
  0xe3   : > { %543 = vmatmul.bf16.gmra.mxu1 %v443_v52 }
  0xe4   : > { %v408_v53 = vpop.f32.mrf.mxu0 }
  0xe5   : > { %v409_v54 = vadd.f32 %v1274_v18, %v408_v53 }
  0xe7   : > { %v433_v58 = vmax.f32 %v409_v54, 0.0 }
  0xec   : > { %v410_v55 = vpop.f32.mrf.mxu0 }
  0xed   : > { %v411_v56 = vadd.f32 %v1274_v18, %v410_v55 }
  0xef   : > { %v434_v59 = vmax.f32 %v411_v56, 0.0 }
  0xf1   : > { %v444_v60 = vpack.c.bf16 %v434_v59, %v433_v58 }
  0xf3   : > { %548 = vmatmul.bf16.gmra.mxu1 %v444_v60 }
  0xf4   : > { %v413_v62 = vpop.f32.mrf.mxu0 }
  0xf5   : > { %v414_v1 = vadd.f32 %v1274_v18, %v413_v62 }
  0xf7   : > { %v435_v5 = vmax.f32 %v414_v1, 0.0 }
  0xfc   : > { %v415_v2 = vpop.f32.mrf.mxu0 }
  0xfd   : > { %v416_v3 = vadd.f32 %v1274_v18, %v415_v2 }
  0xff   : > { %v436_v6 = vmax.f32 %v416_v3, 0.0 }
 0x101   : > { %v445_v7 = vpack.c.bf16 %v436_v6, %v435_v5 }
 0x103   : > { %553 = vmatmul.bf16.vlgmr.msra.gmra.mxu3 %v445_v7 }
 0x104   : > { %v418_v9 = vpop.f32.mrf.mxu0 }
 0x105   : > { %v419_v12 = vadd.f32 %v1274_v18, %v418_v9 }
 0x107   : > { %v437_v15 = vmax.f32 %v419_v12, 0.0  ;;  %v1067_v12 = vld [vmem:[%s1375_s6] ss:$0 sm:$0xff] }
 0x10c   : > { %v420_v13 = vpop.f32.mrf.mxu0 }
 0x10d   : > { %v421_v14 = vadd.f32 %v1274_v18, %v420_v13 }
 0x10f   : > { %v438_v16 = vmax.f32 %v421_v14, 0.0 }
 0x111   : > { %v446_v17 = vpack.c.bf16 %v438_v16, %v437_v15 }
 0x113   : > { %558 = vmatmul.bf16.gmra.mxu3 %v446_v17 }
 0x120   : > { %v524_v19 = vpop.f32.mrf.mxu1 }
 0x121   : > { %v525_v21 = vadd.f32 %v1066_v20, %v524_v19 }
 0x123   : > { %v564_v24 = vmax.f32 %v525_v21, 0.0 }
 0x128   : > { %v526_v22 = vpop.f32.mrf.mxu1 }
 0x129   : > { %v527_v23 = vadd.f32 %v1066_v20, %v526_v22 }
 0x12b   : > { %v565_v25 = vmax.f32 %v527_v23, 0.0 }
 0x12d   : > { %v580_v26 = vpack.c.bf16 %v565_v25, %v564_v24 }
 0x12f   : > { %664 = vmatmul.bf16.vlgmr.msra.gmra.mxu2 %v580_v26 }
 0x130   : > { %v529_v27 = vpop.f32.mrf.mxu1 }
 0x131   : > { %v530_v28 = vadd.f32 %v1066_v20, %v529_v27 }
 0x133   : > { %v566_v30 = vmax.f32 %v530_v28, 0.0 }
 0x138   : > { %v531_v29 = vpop.f32.mrf.mxu1 }
 0x139   : > { %v532_v18 = vadd.f32 %v1066_v20, %v531_v29 }
 0x13b   : > { %v567_v31 = vmax.f32 %v532_v18, 0.0 }
 0x13d   : > { %v581_v32 = vpack.c.bf16 %v567_v31, %v566_v30 }
 0x13f   : > { %669 = vmatmul.bf16.gmra.mxu2 %v581_v32 }
 0x140   : > { %v534_v33 = vpop.f32.mrf.mxu1 }
 0x141   : > { %v535_v34 = vadd.f32 %v1066_v20, %v534_v33 }
 0x143   : > { %v568_v37 = vmax.f32 %v535_v34, 0.0 }
 0x148   : > { %v536_v35 = vpop.f32.mrf.mxu1 }
 0x149   : > { %v537_v36 = vadd.f32 %v1066_v20, %v536_v35 }
 0x14b   : > { %v569_v38 = vmax.f32 %v537_v36, 0.0 }
 0x14d   : > { %v582_v39 = vpack.c.bf16 %v569_v38, %v568_v37 }
 0x14f   : > { %674 = vmatmul.bf16.gmra.mxu2 %v582_v39 }
 0x150   : > { %v539_v40 = vpop.f32.mrf.mxu1 }
 0x151   : > { %v540_v41 = vadd.f32 %v1066_v20, %v539_v40 }
 0x153   : > { %v570_v44 = vmax.f32 %v540_v41, 0.0 }
 0x158   : > { %v541_v42 = vpop.f32.mrf.mxu1 }
 0x159   : > { %v542_v43 = vadd.f32 %v1066_v20, %v541_v42 }
 0x15b   : > { %v571_v45 = vmax.f32 %v542_v43, 0.0 }
 0x15d   : > { %v583_v46 = vpack.c.bf16 %v571_v45, %v570_v44 }
 0x15f   : > { %679 = vmatmul.bf16.gmra.mxu2 %v583_v46 }
 0x160   : > { %v544_v47 = vpop.f32.mrf.mxu1 }
 0x161   : > { %v545_v48 = vadd.f32 %v1066_v20, %v544_v47 }
 0x163   : > { %v572_v51 = vmax.f32 %v545_v48, 0.0 }
 0x168   : > { %v546_v49 = vpop.f32.mrf.mxu1 }
 0x169   : > { %v547_v50 = vadd.f32 %v1066_v20, %v546_v49 }
 0x16b   : > { %v573_v52 = vmax.f32 %v547_v50, 0.0 }
 0x16d   : > { %v584_v53 = vpack.c.bf16 %v573_v52, %v572_v51 }
 0x16f   : > { %684 = vmatmul.bf16.gmra.mxu2 %v584_v53 }
 0x170   : > { %v549_v54 = vpop.f32.mrf.mxu1 }
 0x171   : > { %v550_v55 = vadd.f32 %v1066_v20, %v549_v54 }
 0x173   : > { %v574_v58 = vmax.f32 %v550_v55, 0.0 }
 0x178   : > { %v551_v56 = vpop.f32.mrf.mxu1 }
 0x179   : > { %v552_v57 = vadd.f32 %v1066_v20, %v551_v56 }
 0x17b   : > { %v575_v59 = vmax.f32 %v552_v57, 0.0 }
 0x17d   : > { %v585_v60 = vpack.c.bf16 %v575_v59, %v574_v58 }
 0x17f   : > { %689 = vmatmul.bf16.gmra.mxu2 %v585_v60 }
 0x186   : > { %v554_v61 = vpop.f32.mrf.mxu3 }
 0x187   : > { %v555_v62 = vadd.f32 %v1066_v20, %v554_v61 }
 0x189   : > { %v576_v1 = vmax.f32 %v555_v62, 0.0 }
 0x18e   : > { %v556_v63 = vpop.f32.mrf.mxu3 }
 0x18f   : > { %v557_v0 = vadd.f32 %v1066_v20, %v556_v63 }
 0x191   : > { %v577_v2 = vmax.f32 %v557_v0, 0.0 }
 0x193   : > { %v586_v3 = vpack.c.bf16 %v577_v2, %v576_v1 }
 0x195   : > { %694 = vmatmul.bf16.vlgmr.msrb.gmra.mxu3 %v586_v3 }
 0x196   : > { %v559_v4 = vpop.f32.mrf.mxu3 }
 0x197   : > { %v560_v5 = vadd.f32 %v1066_v20, %v559_v4 }
 0x199   : > { %v578_v8 = vmax.f32 %v560_v5, 0.0 }
 0x19e   : > { %v561_v6 = vpop.f32.mrf.mxu3 }
 0x19f   : > { %v562_v7 = vadd.f32 %v1066_v20, %v561_v6 }
 0x1a1   : > { %v579_v9 = vmax.f32 %v562_v7, 0.0 }
 0x1a3   : > { %v587_v10 = vpack.c.bf16 %v579_v9, %v578_v8 }
 0x1a5   : > { %699 = vmatmul.bf16.gmra.mxu3 %v587_v10 }
 0x1b2   : > { %v665_v11 = vpop.f32.mrf.mxu2 }
 0x1b3   : > { %v666_v14 = vadd.f32 %v1067_v12, %v665_v11 }
 0x1ba   : > { %v667_v13 = vpop.f32.mrf.mxu2 }
 0x1bb   : > { %v668_v15 = vadd.f32 %v1067_v12, %v667_v13 }
 0x1bd   : > { %v964_v16 = vpack.c.bf16 %v668_v15, %v666_v14 }
 0x1bf   : > { %965 = vst [vmem:[%s1325_s18] sm:$0xff] %v964_v16  }
 0x1c2   : > { %v670_v17 = vpop.f32.mrf.mxu2 }
 0x1c3   : > { %v671_v20 = vadd.f32 %v1067_v12, %v670_v17 }
 0x1ca   : > { %v672_v19 = vpop.f32.mrf.mxu2 }
 0x1cb   : > { %v673_v21 = vadd.f32 %v1067_v12, %v672_v19 }
 0x1cd   : > { %v969_v22 = vpack.c.bf16 %v673_v21, %v671_v20 }
 0x1cf   : > { %1001 = vst [vmem:[%s1325_s18 + $0x8] sm:$0xff] %v969_v22  }
 0x1d2   : > { %v675_v23 = vpop.f32.mrf.mxu2 }
 0x1d3   : > { %v676_v25 = vadd.f32 %v1067_v12, %v675_v23 }
 0x1da   : > { %v677_v24 = vpop.f32.mrf.mxu2 }
 0x1db   : > { %v678_v26 = vadd.f32 %v1067_v12, %v677_v24 }
 0x1dd   : > { %v974_v27 = vpack.c.bf16 %v678_v26, %v676_v25 }
 0x1df   : > { %1002 = vst [vmem:[%s1325_s18 + $0x10] sm:$0xff] %v974_v27  }
 0x1e2   : > { %v680_v28 = vpop.f32.mrf.mxu2 }
 0x1e3   : > { %v681_v18 = vadd.f32 %v1067_v12, %v680_v28 }
 0x1ea   : > { %v682_v29 = vpop.f32.mrf.mxu2 }
 0x1eb   : > { %v683_v30 = vadd.f32 %v1067_v12, %v682_v29 }
 0x1ed   : > { %v979_v31 = vpack.c.bf16 %v683_v30, %v681_v18 }
 0x1ef   : > { %1003 = vst [vmem:[%s1325_s18 + $0x18] sm:$0xff] %v979_v31  }
 0x1f2   : > { %v685_v32 = vpop.f32.mrf.mxu2 }
 0x1f3   : > { %v686_v34 = vadd.f32 %v1067_v12, %v685_v32 }
 0x1fa   : > { %v687_v33 = vpop.f32.mrf.mxu2 }
 0x1fb   : > { %v688_v35 = vadd.f32 %v1067_v12, %v687_v33 }
 0x1fd   : > { %v984_v36 = vpack.c.bf16 %v688_v35, %v686_v34 }
 0x1ff   : > { %1004 = vst [vmem:[%s1325_s18 + $0x20] sm:$0xff] %v984_v36  }
 0x202   : > { %v690_v37 = vpop.f32.mrf.mxu2 }
 0x203   : > { %v691_v39 = vadd.f32 %v1067_v12, %v690_v37 }
 0x20a   : > { %v692_v38 = vpop.f32.mrf.mxu2 }
 0x20b   : > { %v693_v40 = vadd.f32 %v1067_v12, %v692_v38 }
 0x20d   : > { %v989_v41 = vpack.c.bf16 %v693_v40, %v691_v39 }
 0x20f   : > { %1005 = vst [vmem:[%s1325_s18 + $0x28] sm:$0xff] %v989_v41  }
 0x218   : > { %v695_v42 = vpop.f32.mrf.mxu3 }
 0x219   : > { %v696_v44 = vadd.f32 %v1067_v12, %v695_v42 }
 0x220   : > { %v697_v43 = vpop.f32.mrf.mxu3 }
 0x221   : > { %v698_v45 = vadd.f32 %v1067_v12, %v697_v43 }
 0x223   : > { %v994_v46 = vpack.c.bf16 %v698_v45, %v696_v44 }
 0x225   : > { %1006 = vst [vmem:[%s1325_s18 + $0x30] sm:$0xff] %v994_v46  }
 0x228   : > { %v700_v47 = vpop.f32.mrf.mxu3 }
 0x229   : > { %v701_v49 = vadd.f32 %v1067_v12, %v700_v47 }
 0x230   : > { %v702_v48 = vpop.f32.mrf.mxu3 }
 0x231   : > { %v703_v50 = vadd.f32 %v1067_v12, %v702_v48 }
 0x233   : > { %v999_v51 = vpack.c.bf16 %v703_v50, %v701_v49 }
 0x235   : > { %1007 = vst [vmem:[%s1325_s18 + $0x38] sm:$0xff] %v999_v51  }
 0x236   : > { %1095 = shalt.err (!%p1092_p3)
}
 0x237   : > { %s1132_s14 = smov 64   ;;  %s1133_s18 = smov 4  }
 0x238   : > { %1024 = dma.vmem_to_hbm [thread:$0]  (%p1212_p5), %s751_s29, 1024, %s753_s19, %s738_s8, %s1132_s14, %s1132_s14, %s1133_s18  }
 0x239 PF: > { %p1030_p4 = scmp.ge.s32.totalorder %s1130_s27, 2  ;;  %s767_s21 = sand.u32 1, %s1118_s24  }
 0x23a   : > { %s768_s22 = scalar_lea.sflag [#allocation3], %s767_s21 }
 0x23b   : > { %p1027_p7 = pnand %p1030_p4, %p1216_p6 }
 0x23d   : > { %p1028_p8 = pneg %p1027_p7 }
 0x23f   : > { %1113 = dma.done.wait (%p1028_p8), %s768_s22, 1024  }
 0x240   : > { %1115 = vsyncadd (%p1028_p8), %s768_s22, 4294966272  ;;  %p17_p9 = scmp.ge.s32.totalorder %s1199_s30, 4   ;;  %s1379_s24 = smov %s1122_s25 }
 0x241   : > { %s1380_s25 = smov %s1126_s26  ;;  %s1381_s26 = smov %s1210_s10 }
 0x242   : > { %s1382_s27 = smov %s1199_s30  ;;  %19 = sbr.rel (!%p17_p9) target bundleno = 3 (0x3), region = 83 }
 0x247   :  { %774 = vsyncpa [#allocation3], 1 }
 0x248   :  { %776 = vsyncpa [#allocation3 + $0x1], 1 }

</bundles_post_ra>
